<compile_context>
chip_gen: v6e
topology: v6e:2x2x1
jax: 0.10.0
libtpu: 0.0.40
codegen_flags: <defaults>
</compile_context>

<pallas_src>
import functools

import jax
import jax.numpy as jnp
import numpy as np
from jax.experimental import pallas as pl
from jax.experimental.pallas import tpu as pltpu

BN_EPS = 1e-5


# ---------------------------------------------------------------------------
# In-kernel helpers (operate on VMEM-resident values)
# ---------------------------------------------------------------------------
def _shift_lanes(x, s):
    """out[:, i] = x[:, i + s], zero-filled where i + s is out of range (static s)."""
    if s == 0:
        return x
    c, m = x.shape
    z = jnp.zeros((c, abs(s)), x.dtype)
    if s > 0:
        return jnp.concatenate([x[:, s:], z], axis=1)
    return jnp.concatenate([z, x[:, :m + s]], axis=1)


def _conv3x3_lanes(x, w2d, width):
    """3x3 / pad 1 / stride 1 conv in (channels, flat-spatial) layout.

    x: (Cin, M) compute-dtype value; w2d: (Cout, 9*Cin) BN-folded weights with
    column block t = kh*3 + kw holding the (kh, kw) tap.  The 9 taps are
    zero-filled lane shifts of x (column validity handled by pre-masking the
    left/right source copies), stacked along sublanes and contracted in a
    single MXU GEMM with f32 accumulation.  Returns (Cout, M) f32 (no bias).
    """
    cin, m = x.shape
    ox = jax.lax.broadcasted_iota(jnp.int32, (cin, m), 1) % width
    # kw == 0 taps read column ox-1: pre-zero input column W-1 so the wrapped
    # lane shift reads 0 exactly where the conv's left padding applies.
    xl = jnp.where(ox != width - 1, x, jnp.zeros_like(x))
    # kw == 2 taps read column ox+1: pre-zero input column 0 (right padding).
    xr = jnp.where(ox != 0, x, jnp.zeros_like(x))
    srcs = (xl, x, xr)
    taps = [
        _shift_lanes(srcs[kw], (kh - 1) * width + (kw - 1))
        for kh in range(3) for kw in range(3)
    ]
    patch = jnp.concatenate(taps, axis=0)                     # (9*Cin, M)
    return jnp.dot(w2d, patch, preferred_element_type=jnp.float32)


# ---------------------------------------------------------------------------
# Fused BasicBlock kernel
# ---------------------------------------------------------------------------
def _basic_block_kernel(*refs, H, W, stride, has_shortcut):
    if has_shortcut:
        (x_ref, w1_ref, b1_ref, w2_ref, b2_ref, ssub_ref, cmap_ref, o_ref) = refs
    else:
        (x_ref, w1_ref, b1_ref, w2_ref, b2_ref, o_ref) = refs

    cdt = w1_ref.dtype                     # bf16 compute dtype
    x = x_ref[...]                         # (in_planes, H*W) bf16

    # conv1 + folded BN1 + ReLU (computed at stride 1; exactly subsampled below
    # if stride 2).
    h = _conv3x3_lanes(x, w1_ref[...], W) + b1_ref[...]
    h = jnp.maximum(h, 0.0).astype(cdt)    # (planes, H*W), stays in VMEM

    wo = W
    if stride == 2:
        # stride-2 conv1 output == stride-1 output sampled at even (y, x):
        # exact 0/1 selection GEMM (matrix built host-side, resident in VMEM).
        ssub = ssub_ref[...]                                   # (H*W, Ho*Wo)
        h = jnp.dot(h, ssub, preferred_element_type=jnp.float32).astype(cdt)
        wo = W // 2

    # conv2 + folded BN2
    out = _conv3x3_lanes(h, w2_ref[...], wo) + b2_ref[...]     # (planes, Ho*Wo) f32

    # shortcut: identity, or option 'A' = x[:, ::2, ::2] zero-padded by planes//4
    # channels on each side (channel placement as an exact 0/1 GEMM).
    if has_shortcut:
        sub = jnp.dot(x, ssub, preferred_element_type=jnp.float32).astype(cdt)
        res = jnp.dot(cmap_ref[...], sub, preferred_element_type=jnp.float32)
    else:
        res = x.astype(jnp.float32)

    o_ref[...] = jnp.maximum(out + res, 0.0).astype(o_ref.dtype)


# ---------------------------------------------------------------------------
# Host-side helpers
# ---------------------------------------------------------------------------
def _fold_bn(w_oihw, bn, cdt):
    """Fold inference BatchNorm into the conv weight.

    Returns (w: (Cout, 9*Cin) in cdt, column block t = kh*3 + kw;
             bias: (Cout, 1) f32).
    """
    scale = bn["gamma"] / jnp.sqrt(bn["var"] + BN_EPS)
    bias = bn["beta"] - bn["mean"] * scale
    cout, cin = w_oihw.shape[0], w_oihw.shape[1]
    w = w_oihw * scale[:, None, None, None]                     # (O, I, 3, 3)
    w = jnp.transpose(w, (0, 2, 3, 1)).reshape(cout, 9 * cin)   # (O, kh, kw, I)
    return w.astype(cdt), bias[:, None].astype(jnp.float32)


def _subsample_matrix_host(h, w):
    """0/1 matrix S of shape (h*w, (h//2)*(w//2)) with X @ S == x[:, ::2, ::2] flat."""
    ho, wo = h // 2, w // 2
    s = np.zeros((h * w, ho * wo), np.float32)
    c = np.arange(ho * wo)
    rows = (c // wo) * (2 * w) + (c % wo) * 2
    s[rows, c] = 1.0
    return s


def _channel_pad_matrix_host(planes, cin, pad):
    """0/1 matrix P (planes, cin): P @ v places v's channels at row offset `pad`."""
    p = np.zeros((planes, cin), np.float32)
    p[np.arange(cin) + pad, np.arange(cin)] = 1.0
    return p


def basic_block_forward(x_nchw, params):
    """Pallas TPU forward of the CIFAR BasicBlock (eval-mode BatchNorm), NCHW in/out."""
    stride = int(params["stride"])
    in_planes = int(params["in_planes"])
    planes = int(params["planes"])
    B, C, H, W = x_nchw.shape
    assert C == in_planes, (C, in_planes)
    assert stride in (1, 2)
    has_shortcut = (stride != 1) or (in_planes != planes)
    if has_shortcut:
        # Option 'A': x[:, :, ::2, ::2] zero-padded by planes//4 channels per side.
        # Any other combination is a shape error in the PyTorch module as well.
        assert stride == 2 and H % 2 == 0 and W % 2 == 0
        assert in_planes + 2 * (planes // 4) == planes
    ho, wo = H // stride, W // stride

    cdt = jnp.bfloat16
    x2 = x_nchw.reshape(B, C, H * W).astype(cdt)        # channels x flat-spatial
    w1, b1 = _fold_bn(params["conv1_w"], params["bn1"], cdt)
    w2, b2 = _fold_bn(params["conv2_w"], params["bn2"], cdt)

    in_specs = [
        pl.BlockSpec((None, C, H * W), lambda b: (b, 0, 0)),
        pl.BlockSpec((planes, 9 * in_planes), lambda b: (0, 0)),
        pl.BlockSpec((planes, 1), lambda b: (0, 0)),
        pl.BlockSpec((planes, 9 * planes), lambda b: (0, 0)),
        pl.BlockSpec((planes, 1), lambda b: (0, 0)),
    ]
    args = [x2, w1, b1, w2, b2]
    if has_shortcut:
        ssub = jnp.asarray(_subsample_matrix_host(H, W), cdt)              # (H*W, Ho*Wo)
        cmap = jnp.asarray(_channel_pad_matrix_host(planes, in_planes,
                                                    planes // 4), cdt)      # (planes, Cin)
        in_specs += [
            pl.BlockSpec((H * W, ho * wo), lambda b: (0, 0)),
            pl.BlockSpec((planes, in_planes), lambda b: (0, 0)),
        ]
        args += [ssub, cmap]

    kernel = functools.partial(_basic_block_kernel, H=H, W=W, stride=stride,
                               has_shortcut=has_shortcut)
    out = pl.pallas_call(
        kernel,
        out_shape=jax.ShapeDtypeStruct((B, planes, ho * wo), jnp.float32),
        grid=(B,),
        in_specs=in_specs,
        out_specs=pl.BlockSpec((None, planes, ho * wo), lambda b: (b, 0, 0)),
        compiler_params=pltpu.CompilerParams(dimension_semantics=("parallel",)),
    )(*args)
    return out.reshape(B, planes, ho, wo)               # NCHW


# ---------------------------------------------------------------------------
# Pure-JAX reference (f32, HIGHEST precision) and parameter init
# ---------------------------------------------------------------------------
def basic_block_reference(x_nchw, params):
    stride = int(params["stride"])
    in_planes = int(params["in_planes"])
    planes = int(params["planes"])

    def conv_bn(x, w, bn, s):
        y = jax.lax.conv_general_dilated(
            x, w, window_strides=(s, s), padding=((1, 1), (1, 1)),
            dimension_numbers=("NCHW", "OIHW", "NCHW"),
            precision=jax.lax.Precision.HIGHEST)
        scale = bn["gamma"] / jnp.sqrt(bn["var"] + BN_EPS)
        bias = bn["beta"] - bn["mean"] * scale
        return y * scale[None, :, None, None] + bias[None, :, None, None]

    out = jax.nn.relu(conv_bn(x_nchw, params["conv1_w"], params["bn1"], stride))
    out = conv_bn(out, params["conv2_w"], params["bn2"], 1)
    if stride != 1 or in_planes != planes:
        p = planes // 4
        sc = jnp.pad(x_nchw[:, :, ::2, ::2], ((0, 0), (p, p), (0, 0), (0, 0)))
    else:
        sc = x_nchw
    return jax.nn.relu(out + sc)


def init_basic_block_params(key, in_planes, planes, stride):
    kw1, kb1, kw2, kb2 = jax.random.split(key, 4)

    def kaiming(k, shape):
        fan_in = shape[1] * shape[2] * shape[3]
        return jax.random.normal(k, shape, jnp.float32) * jnp.sqrt(2.0 / fan_in)

    def bn_params(k, c):
        kg, kb, km, kv = jax.random.split(k, 4)
        return dict(
            gamma=1.0 + 0.1 * jax.random.normal(kg, (c,), jnp.float32),
            beta=0.1 * jax.random.normal(kb, (c,), jnp.float32),
            mean=0.1 * jax.random.normal(km, (c,), jnp.float32),
            var=1.0 + 0.5 * jax.random.uniform(kv, (c,), jnp.float32),
        )

    return dict(
        conv1_w=kaiming(kw1, (planes, in_planes, 3, 3)),
        bn1=bn_params(kb1, planes),
        conv2_w=kaiming(kw2, (planes, planes, 3, 3)),
        bn2=bn_params(kb2, planes),
        in_planes=in_planes, planes=planes, stride=stride,
    )


if __name__ == "__main__":
    key = jax.random.PRNGKey(0)
    kx, kp1, kp2 = jax.random.split(key, 3)
    x = jax.random.normal(kx, (2, 16, 16, 16), jnp.float32)   # NCHW: B=2, C=16, 16x16

    # (a) identity-shortcut block: stride 1, in_planes == planes == 16
    p_id = init_basic_block_params(kp1, in_planes=16, planes=16, stride=1)
    y_id = basic_block_forward(x, p_id)
    jax.block_until_ready(y_id)
    assert y_id.shape == (2, 16, 16, 16) and y_id.dtype == jnp.float32
    np.testing.assert_allclose(np.asarray(y_id),
                               np.asarray(basic_block_reference(x, p_id)),
                               atol=1e-1, rtol=1e-1)

    # (b) downsampling block with option-'A' shortcut: stride 2, 16 -> 32 planes
    p_dn = init_basic_block_params(kp2, in_planes=16, planes=32, stride=2)
    y_dn = basic_block_forward(x, p_dn)
    jax.block_until_ready(y_dn)
    assert y_dn.shape == (2, 32, 8, 8) and y_dn.dtype == jnp.float32
    np.testing.assert_allclose(np.asarray(y_dn),
                               np.asarray(basic_block_reference(x, p_dn)),
                               atol=1e-1, rtol=1e-1)

    print("KERNEL_OK")
</pallas_src>

<mosaic_0001>
module attributes {stable_mosaic.version = 11 : i64} {
  func.func @_basic_block_kernel(%arg0: i32, %arg1: memref<1x16x256xbf16, #tpu.memory_space<vmem>>, %arg2: memref<16x144xbf16, #tpu.memory_space<vmem>>, %arg3: memref<16x1xf32, #tpu.memory_space<vmem>>, %arg4: memref<16x144xbf16, #tpu.memory_space<vmem>>, %arg5: memref<16x1xf32, #tpu.memory_space<vmem>>, %arg6: memref<1x16x256xf32, #tpu.memory_space<vmem>>) attributes {dimension_semantics = [#tpu.dimension_semantics<parallel>], iteration_bounds = array<i64: 2>, scalar_prefetch = 0 : i64, scratch_operands = 0 : i64, tpu.core_type = #tpu.core_type<tc>, window_params = [{transform_indices = @transform_0, window_bounds = array<i64: 1, 16, 256>}, {pipeline_mode = #tpu.pipeline_mode<synchronous>, transform_indices = @transform_1, window_bounds = array<i64: 16, 144>}, {pipeline_mode = #tpu.pipeline_mode<synchronous>, transform_indices = @transform_2, window_bounds = array<i64: 16, 1>}, {pipeline_mode = #tpu.pipeline_mode<synchronous>, transform_indices = @transform_3, window_bounds = array<i64: 16, 144>}, {pipeline_mode = #tpu.pipeline_mode<synchronous>, transform_indices = @transform_4, window_bounds = array<i64: 16, 1>}, {transform_indices = @transform_5, window_bounds = array<i64: 1, 16, 256>}]} {
    %c0 = arith.constant 0 : index
    %c0_0 = arith.constant 0 : index
    %c0_1 = arith.constant 0 : index
    %0 = vector.load %arg1[%c0, %c0_0, %c0_1] : memref<1x16x256xbf16, #tpu.memory_space<vmem>>, vector<1x16x256xbf16>
    %1 = vector.shape_cast %0 : vector<1x16x256xbf16> to vector<16x256xbf16>
    %c0_2 = arith.constant 0 : index
    %c0_3 = arith.constant 0 : index
    %2 = vector.load %arg2[%c0_2, %c0_3] : memref<16x144xbf16, #tpu.memory_space<vmem>>, vector<16x144xbf16>
    %3 = tpu.iota {dimensions = array<i32: 1>} : vector<16x256xi32>
    %c16_i32 = arith.constant 16 : i32
    %c0_i32 = arith.constant 0 : i32
    %4 = arith.cmpi eq, %c16_i32, %c0_i32 : i32
    %c1_i32 = arith.constant 1 : i32
    %5 = arith.select %4, %c1_i32, %c16_i32 : i32
    %6 = vector.broadcast %5 : i32 to vector<16x256xi32>
    %7 = arith.remsi %3, %6 : vector<16x256xi32>
    %c0_i32_4 = arith.constant 0 : i32
    %8 = vector.broadcast %c0_i32_4 : i32 to vector<16x256xi32>
    %9 = arith.cmpi ne, %7, %8 : vector<16x256xi32>
    %c0_i32_5 = arith.constant 0 : i32
    %10 = vector.broadcast %c0_i32_5 : i32 to vector<16x256xi32>
    %11 = arith.cmpi slt, %7, %10 : vector<16x256xi32>
    %c0_i32_6 = arith.constant 0 : i32
    %12 = arith.cmpi slt, %5, %c0_i32_6 : i32
    %13 = vector.broadcast %12 : i1 to vector<16x256xi1>
    %14 = vector.broadcast %13 : vector<16x256xi1> to vector<16x256xi1>
    %15 = arith.xori %11, %14 : vector<16x256xi1>
    %16 = arith.andi %15, %9 : vector<16x256xi1>
    %17 = vector.broadcast %5 : i32 to vector<16x256xi32>
    %18 = arith.addi %7, %17 : vector<16x256xi32>
    %19 = arith.select %16, %18, %7 : vector<16x256xi1>, vector<16x256xi32>
    %c15_i32 = arith.constant 15 : i32
    %20 = vector.broadcast %c15_i32 : i32 to vector<16x256xi32>
    %21 = arith.cmpi ne, %19, %20 : vector<16x256xi32>
    %cst = arith.constant 0.000000e+00 : bf16
    %22 = vector.broadcast %cst : bf16 to vector<16x256xbf16>
    %23 = arith.select %21, %1, %22 : vector<16x256xi1>, vector<16x256xbf16>
    %c0_i32_7 = arith.constant 0 : i32
    %24 = vector.broadcast %c0_i32_7 : i32 to vector<16x256xi32>
    %25 = arith.cmpi ne, %19, %24 : vector<16x256xi32>
    %cst_8 = arith.constant 0.000000e+00 : bf16
    %26 = vector.broadcast %cst_8 : bf16 to vector<16x256xbf16>
    %27 = arith.select %25, %1, %26 : vector<16x256xi1>, vector<16x256xbf16>
    %cst_9 = arith.constant 0.000000e+00 : bf16
    %28 = vector.broadcast %cst_9 : bf16 to vector<16x17xbf16>
    %29 = vector.extract_strided_slice %23 {offsets = [0, 0], sizes = [16, 239], strides = [1, 1]} : vector<16x256xbf16> to vector<16x239xbf16>
    %30 = tpu.concatenate %28, %29 in 1 : vector<16x17xbf16>, vector<16x239xbf16> -> vector<16x256xbf16>
    %cst_10 = arith.constant 0.000000e+00 : bf16
    %31 = vector.broadcast %cst_10 : bf16 to vector<16x16xbf16>
    %32 = vector.extract_strided_slice %1 {offsets = [0, 0], sizes = [16, 240], strides = [1, 1]} : vector<16x256xbf16> to vector<16x240xbf16>
    %33 = tpu.concatenate %31, %32 in 1 : vector<16x16xbf16>, vector<16x240xbf16> -> vector<16x256xbf16>
    %cst_11 = arith.constant 0.000000e+00 : bf16
    %34 = vector.broadcast %cst_11 : bf16 to vector<16x15xbf16>
    %35 = vector.extract_strided_slice %27 {offsets = [0, 0], sizes = [16, 241], strides = [1, 1]} : vector<16x256xbf16> to vector<16x241xbf16>
    %36 = tpu.concatenate %34, %35 in 1 : vector<16x15xbf16>, vector<16x241xbf16> -> vector<16x256xbf16>
    %cst_12 = arith.constant 0.000000e+00 : bf16
    %37 = vector.broadcast %cst_12 : bf16 to vector<16x1xbf16>
    %38 = vector.extract_strided_slice %23 {offsets = [0, 0], sizes = [16, 255], strides = [1, 1]} : vector<16x256xbf16> to vector<16x255xbf16>
    %39 = tpu.concatenate %37, %38 in 1 : vector<16x1xbf16>, vector<16x255xbf16> -> vector<16x256xbf16>
    %cst_13 = arith.constant 0.000000e+00 : bf16
    %40 = vector.broadcast %cst_13 : bf16 to vector<16x1xbf16>
    %41 = vector.extract_strided_slice %27 {offsets = [0, 1], sizes = [16, 255], strides = [1, 1]} : vector<16x256xbf16> to vector<16x255xbf16>
    %42 = tpu.concatenate %41, %40 in 1 : vector<16x255xbf16>, vector<16x1xbf16> -> vector<16x256xbf16>
    %cst_14 = arith.constant 0.000000e+00 : bf16
    %43 = vector.broadcast %cst_14 : bf16 to vector<16x15xbf16>
    %44 = vector.extract_strided_slice %23 {offsets = [0, 15], sizes = [16, 241], strides = [1, 1]} : vector<16x256xbf16> to vector<16x241xbf16>
    %45 = tpu.concatenate %44, %43 in 1 : vector<16x241xbf16>, vector<16x15xbf16> -> vector<16x256xbf16>
    %cst_15 = arith.constant 0.000000e+00 : bf16
    %46 = vector.broadcast %cst_15 : bf16 to vector<16x16xbf16>
    %47 = vector.extract_strided_slice %1 {offsets = [0, 16], sizes = [16, 240], strides = [1, 1]} : vector<16x256xbf16> to vector<16x240xbf16>
    %48 = tpu.concatenate %47, %46 in 1 : vector<16x240xbf16>, vector<16x16xbf16> -> vector<16x256xbf16>
    %cst_16 = arith.constant 0.000000e+00 : bf16
    %49 = vector.broadcast %cst_16 : bf16 to vector<16x17xbf16>
    %50 = vector.extract_strided_slice %27 {offsets = [0, 17], sizes = [16, 239], strides = [1, 1]} : vector<16x256xbf16> to vector<16x239xbf16>
    %51 = tpu.concatenate %50, %49 in 1 : vector<16x239xbf16>, vector<16x17xbf16> -> vector<16x256xbf16>
    %52 = tpu.concatenate %30, %33, %36, %39, %1, %42, %45, %48, %51 in 0 : vector<16x256xbf16>, vector<16x256xbf16>, vector<16x256xbf16>, vector<16x256xbf16>, vector<16x256xbf16>, vector<16x256xbf16>, vector<16x256xbf16>, vector<16x256xbf16>, vector<16x256xbf16> -> vector<144x256xbf16>
    %cst_17 = arith.constant dense<0.000000e+00> : vector<16x256xf32>
    %53 = tpu.matmul %2, %52, %cst_17 {dimension_numbers = #tpu.dot_dimension_numbers<[1], [0], [0], [1], [0, 0, 1, 1], [], []>} : vector<16x144xbf16>, vector<144x256xbf16>, vector<16x256xf32> -> vector<16x256xf32>
    %c0_18 = arith.constant 0 : index
    %c0_19 = arith.constant 0 : index
    %54 = vector.load %arg3[%c0_18, %c0_19] : memref<16x1xf32, #tpu.memory_space<vmem>>, vector<16x1xf32>
    %55 = vector.broadcast %54 : vector<16x1xf32> to vector<16x256xf32>
    %56 = arith.addf %53, %55 : vector<16x256xf32>
    %cst_20 = arith.constant 0.000000e+00 : f32
    %57 = vector.broadcast %cst_20 : f32 to vector<16x256xf32>
    %58 = arith.maximumf %56, %57 : vector<16x256xf32>
    %59 = arith.truncf %58 : vector<16x256xf32> to vector<16x256xbf16>
    %c0_21 = arith.constant 0 : index
    %c0_22 = arith.constant 0 : index
    %60 = vector.load %arg4[%c0_21, %c0_22] : memref<16x144xbf16, #tpu.memory_space<vmem>>, vector<16x144xbf16>
    %61 = tpu.iota {dimensions = array<i32: 1>} : vector<16x256xi32>
    %c16_i32_23 = arith.constant 16 : i32
    %c0_i32_24 = arith.constant 0 : i32
    %62 = arith.cmpi eq, %c16_i32_23, %c0_i32_24 : i32
    %c1_i32_25 = arith.constant 1 : i32
    %63 = arith.select %62, %c1_i32_25, %c16_i32_23 : i32
    %64 = vector.broadcast %63 : i32 to vector<16x256xi32>
    %65 = arith.remsi %61, %64 : vector<16x256xi32>
    %c0_i32_26 = arith.constant 0 : i32
    %66 = vector.broadcast %c0_i32_26 : i32 to vector<16x256xi32>
    %67 = arith.cmpi ne, %65, %66 : vector<16x256xi32>
    %c0_i32_27 = arith.constant 0 : i32
    %68 = vector.broadcast %c0_i32_27 : i32 to vector<16x256xi32>
    %69 = arith.cmpi slt, %65, %68 : vector<16x256xi32>
    %c0_i32_28 = arith.constant 0 : i32
    %70 = arith.cmpi slt, %63, %c0_i32_28 : i32
    %71 = vector.broadcast %70 : i1 to vector<16x256xi1>
    %72 = vector.broadcast %71 : vector<16x256xi1> to vector<16x256xi1>
    %73 = arith.xori %69, %72 : vector<16x256xi1>
    %74 = arith.andi %73, %67 : vector<16x256xi1>
    %75 = vector.broadcast %63 : i32 to vector<16x256xi32>
    %76 = arith.addi %65, %75 : vector<16x256xi32>
    %77 = arith.select %74, %76, %65 : vector<16x256xi1>, vector<16x256xi32>
    %c15_i32_29 = arith.constant 15 : i32
    %78 = vector.broadcast %c15_i32_29 : i32 to vector<16x256xi32>
    %79 = arith.cmpi ne, %77, %78 : vector<16x256xi32>
    %cst_30 = arith.constant 0.000000e+00 : bf16
    %80 = vector.broadcast %cst_30 : bf16 to vector<16x256xbf16>
    %81 = arith.select %79, %59, %80 : vector<16x256xi1>, vector<16x256xbf16>
    %c0_i32_31 = arith.constant 0 : i32
    %82 = vector.broadcast %c0_i32_31 : i32 to vector<16x256xi32>
    %83 = arith.cmpi ne, %77, %82 : vector<16x256xi32>
    %cst_32 = arith.constant 0.000000e+00 : bf16
    %84 = vector.broadcast %cst_32 : bf16 to vector<16x256xbf16>
    %85 = arith.select %83, %59, %84 : vector<16x256xi1>, vector<16x256xbf16>
    %cst_33 = arith.constant 0.000000e+00 : bf16
    %86 = vector.broadcast %cst_33 : bf16 to vector<16x17xbf16>
    %87 = vector.extract_strided_slice %81 {offsets = [0, 0], sizes = [16, 239], strides = [1, 1]} : vector<16x256xbf16> to vector<16x239xbf16>
    %88 = tpu.concatenate %86, %87 in 1 : vector<16x17xbf16>, vector<16x239xbf16> -> vector<16x256xbf16>
    %cst_34 = arith.constant 0.000000e+00 : bf16
    %89 = vector.broadcast %cst_34 : bf16 to vector<16x16xbf16>
    %90 = vector.extract_strided_slice %59 {offsets = [0, 0], sizes = [16, 240], strides = [1, 1]} : vector<16x256xbf16> to vector<16x240xbf16>
    %91 = tpu.concatenate %89, %90 in 1 : vector<16x16xbf16>, vector<16x240xbf16> -> vector<16x256xbf16>
    %cst_35 = arith.constant 0.000000e+00 : bf16
    %92 = vector.broadcast %cst_35 : bf16 to vector<16x15xbf16>
    %93 = vector.extract_strided_slice %85 {offsets = [0, 0], sizes = [16, 241], strides = [1, 1]} : vector<16x256xbf16> to vector<16x241xbf16>
    %94 = tpu.concatenate %92, %93 in 1 : vector<16x15xbf16>, vector<16x241xbf16> -> vector<16x256xbf16>
    %cst_36 = arith.constant 0.000000e+00 : bf16
    %95 = vector.broadcast %cst_36 : bf16 to vector<16x1xbf16>
    %96 = vector.extract_strided_slice %81 {offsets = [0, 0], sizes = [16, 255], strides = [1, 1]} : vector<16x256xbf16> to vector<16x255xbf16>
    %97 = tpu.concatenate %95, %96 in 1 : vector<16x1xbf16>, vector<16x255xbf16> -> vector<16x256xbf16>
    %cst_37 = arith.constant 0.000000e+00 : bf16
    %98 = vector.broadcast %cst_37 : bf16 to vector<16x1xbf16>
    %99 = vector.extract_strided_slice %85 {offsets = [0, 1], sizes = [16, 255], strides = [1, 1]} : vector<16x256xbf16> to vector<16x255xbf16>
    %100 = tpu.concatenate %99, %98 in 1 : vector<16x255xbf16>, vector<16x1xbf16> -> vector<16x256xbf16>
    %cst_38 = arith.constant 0.000000e+00 : bf16
    %101 = vector.broadcast %cst_38 : bf16 to vector<16x15xbf16>
    %102 = vector.extract_strided_slice %81 {offsets = [0, 15], sizes = [16, 241], strides = [1, 1]} : vector<16x256xbf16> to vector<16x241xbf16>
    %103 = tpu.concatenate %102, %101 in 1 : vector<16x241xbf16>, vector<16x15xbf16> -> vector<16x256xbf16>
    %cst_39 = arith.constant 0.000000e+00 : bf16
    %104 = vector.broadcast %cst_39 : bf16 to vector<16x16xbf16>
    %105 = vector.extract_strided_slice %59 {offsets = [0, 16], sizes = [16, 240], strides = [1, 1]} : vector<16x256xbf16> to vector<16x240xbf16>
    %106 = tpu.concatenate %105, %104 in 1 : vector<16x240xbf16>, vector<16x16xbf16> -> vector<16x256xbf16>
    %cst_40 = arith.constant 0.000000e+00 : bf16
    %107 = vector.broadcast %cst_40 : bf16 to vector<16x17xbf16>
    %108 = vector.extract_strided_slice %85 {offsets = [0, 17], sizes = [16, 239], strides = [1, 1]} : vector<16x256xbf16> to vector<16x239xbf16>
    %109 = tpu.concatenate %108, %107 in 1 : vector<16x239xbf16>, vector<16x17xbf16> -> vector<16x256xbf16>
    %110 = tpu.concatenate %88, %91, %94, %97, %59, %100, %103, %106, %109 in 0 : vector<16x256xbf16>, vector<16x256xbf16>, vector<16x256xbf16>, vector<16x256xbf16>, vector<16x256xbf16>, vector<16x256xbf16>, vector<16x256xbf16>, vector<16x256xbf16>, vector<16x256xbf16> -> vector<144x256xbf16>
    %cst_41 = arith.constant dense<0.000000e+00> : vector<16x256xf32>
    %111 = tpu.matmul %60, %110, %cst_41 {dimension_numbers = #tpu.dot_dimension_numbers<[1], [0], [0], [1], [0, 0, 1, 1], [], []>} : vector<16x144xbf16>, vector<144x256xbf16>, vector<16x256xf32> -> vector<16x256xf32>
    %c0_42 = arith.constant 0 : index
    %c0_43 = arith.constant 0 : index
    %112 = vector.load %arg5[%c0_42, %c0_43] : memref<16x1xf32, #tpu.memory_space<vmem>>, vector<16x1xf32>
    %113 = vector.broadcast %112 : vector<16x1xf32> to vector<16x256xf32>
    %114 = arith.addf %111, %113 : vector<16x256xf32>
    %115 = arith.extf %1 : vector<16x256xbf16> to vector<16x256xf32>
    %116 = arith.addf %114, %115 : vector<16x256xf32>
    %cst_44 = arith.constant 0.000000e+00 : f32
    %117 = vector.broadcast %cst_44 : f32 to vector<16x256xf32>
    %118 = arith.maximumf %116, %117 : vector<16x256xf32>
    %c0_45 = arith.constant 0 : index
    %c0_46 = arith.constant 0 : index
    %c0_47 = arith.constant 0 : index
    %119 = vector.load %arg6[%c0_45, %c0_46, %c0_47] : memref<1x16x256xf32, #tpu.memory_space<vmem>>, vector<1x16x256xf32>
    %120 = vector.shape_cast %119 : vector<1x16x256xf32> to vector<16x256xf32>
    %121 = vector.shape_cast %118 : vector<16x256xf32> to vector<1x16x256xf32>
    tpu.vector_store %arg6[%c0_45, %c0_46, %c0_47], %121 {strides = array<i32>} : memref<1x16x256xf32, #tpu.memory_space<vmem>>, vector<1x16x256xf32>,
    return
  }
  func.func @transform_0(%arg0: i32) -> (i32, i32, i32) {
    %c0_i32 = arith.constant 0 : i32
    %c0_i32_0 = arith.constant 0 : i32
    %c0_i32_1 = arith.constant 0 : i32
    return %arg0, %c0_i32, %c0_i32_0 : i32, i32, i32
  }
  func.func @transform_1(%arg0: i32) -> (i32, i32) {
    %c0_i32 = arith.constant 0 : i32
    %c0_i32_0 = arith.constant 0 : i32
    %c0_i32_1 = arith.constant 0 : i32
    return %c0_i32, %c0_i32_0 : i32, i32
  }
  func.func @transform_2(%arg0: i32) -> (i32, i32) {
    %c0_i32 = arith.constant 0 : i32
    %c0_i32_0 = arith.constant 0 : i32
    %c0_i32_1 = arith.constant 0 : i32
    return %c0_i32, %c0_i32_0 : i32, i32
  }
  func.func @transform_3(%arg0: i32) -> (i32, i32) {
    %c0_i32 = arith.constant 0 : i32
    %c0_i32_0 = arith.constant 0 : i32
    %c0_i32_1 = arith.constant 0 : i32
    return %c0_i32, %c0_i32_0 : i32, i32
  }
  func.func @transform_4(%arg0: i32) -> (i32, i32) {
    %c0_i32 = arith.constant 0 : i32
    %c0_i32_0 = arith.constant 0 : i32
    %c0_i32_1 = arith.constant 0 : i32
    return %c0_i32, %c0_i32_0 : i32, i32
  }
  func.func @transform_5(%arg0: i32) -> (i32, i32, i32) {
    %c0_i32 = arith.constant 0 : i32
    %c0_i32_0 = arith.constant 0 : i32
    %c0_i32_1 = arith.constant 0 : i32
    return %arg0, %c0_i32, %c0_i32_0 : i32, i32, i32
  }
}

</mosaic_0001>

<bundles_post_ra>
// kernel: tpu_custom_call.1
= control target key start
LH: loop header
LB: loop body
LE: loop exit
PB: predicated region body
PF: predicated region fallthrough
CT: control target
= control target key end

     0   :  { %10 = vsyncpa [#allocation3], 0  ;;  %s1376_s0 = inlined_call_operand.vmem [shape: bf16[2,16,256], index: 0, kind: input, shape index: {}]   ;;  %s1377_s1 = inlined_call_operand.hbm [shape: bf16[16,144], index: 1, kind: input, shape index: {}]   ;;  %s1378_s2 = inlined_call_operand.vmem [shape: f32[16,1], index: 2, kind: input, shape index: {}]   ;;  %s1379_s3 = inlined_call_operand.hbm [shape: bf16[16,144], index: 3, kind: input, shape index: {}]   ;;  %s1380_s4 = inlined_call_operand.vmem [shape: f32[16,1], index: 4, kind: input, shape index: {}]   ;;  %s1381_s5 = inlined_call_operand.hbm [shape: f32[2,16,256], index: 5, kind: output, shape index: {}]  }
   0x1   :  { %11 = vsyncpa [#allocation6], 0 }
   0x2   :  { %12 = vsyncpa [#allocation4], 0 }
   0x3   :  { %14 = vsyncpa [#allocation4 + $0x1], 0  ;;  %s1075_s18 = smov 0   ;;  %s1077_s19 = smov 0  }
   0x4   :  { %s1079_s20 = smov 0   ;;  %s1081_s21 = smov 0  }
   0x5 LB: > { %s1096_s22 = sadd.s32 4294967295, %s1028_s21   ;;  %s772_s23 = sadd.s32 4294967294, %s1028_s21   ;;  %s1028_s21 = sphi %s1081_s21, %s1407_s21   ;;  %s1024_s20 = sphi %s1079_s20, %s1406_s20   ;;  %s1020_s19 = sphi %s1077_s19, %s1405_s19   ;;  %s1016_s18 = sphi %s1075_s18, %s1404_s18  }
   0x6   : > { %s1100_s24 = sadd.s32 1, %s1028_s21   ;;  %s137_s25 = sadd.s32 1, %s1024_s20 }
   0x7   : > { %s134_s26 = ssub.s32 %s1028_s21, %s1100_s24  ;;  %p147_p0 = scmp.ne.s32.totalorder %s1024_s20, %s1020_s19 }
   0x8   : > { %p135_p1 = scmp.eq.s32.totalorder %s134_s26, 0  ;;  %p148_p2 = scmp.eq.s32.totalorder %s1096_s22, 1 }
   0x9   : > { %p153_p3 = scmp.ne.s32.totalorder %s1020_s19, %s1016_s18  ;;  %p154_p4 = scmp.eq.s32.totalorder %s772_s23, 1 }
   0xa   : > { %s1111_s27 = scalar_select %p135_p1, %s1024_s20, %s137_s25  }
   0xb   : > { %p1113_p5 = por %p148_p2, %p147_p0  ;;  %p1117_p6 = por %p154_p4, %p153_p3 }
   0xc   : > { %p773_p7 = scmp.ge.s32.totalorder %s1028_s21, 1  ;;  %p161_p8 = scmp.lt.s32.totalorder %s1028_s21, 3 }
   0xd   : > { %s1384_s29 = scalar_select %p1117_p6, 1, 0 }
   0xe   : > { %p1382_p9 = scmp.eq.s32.totalorder %s1096_s22, 0  ;;  %p1124_p10 = pnand %p773_p7, %p161_p8 }
   0xf   : > { %s1030_s6 = smov [#allocation2]   ;;  %s1031_s9 = smov [#allocation5]  }
  0x10   : > { %s173_s7 = sshll.u32 %s1030_s6, 4  ;;  %p836_p11 = pneg %p1124_p10  ;;  %s174_s7 = int_to_ptr.vmem [resolvable:$true] %s173_s7 }
  0x11   : > { %s189_s10 = sshll.u32 %s1031_s9, 4  ;;  %s919_s11 = scalar_lea.vmem %s174_s7, 256  ;;  %s190_s10 = int_to_ptr.vmem [resolvable:$true] %s189_s10 }
  0x12   : > { %p1132_p12 = pnand %p1382_p9, %p836_p11  ;;  %p920_p0 = scmp.ne.s32.totalorder %s174_s7, %s919_s11 }
  0x13   : > { %p927_p3 = scmp.lt.s32.totalorder %s174_s7, %s174_s7  ;;  %p928_p4 = scmp.lt.s32.totalorder %s919_s11, %s919_s11 }
  0x14   : > { %p910_p13 = pneg %p1132_p12 }
  0x15   : > { %p929_p7 = por %p928_p4, %p927_p3 }
  0x16   : > { %p922_p1 = pnand %p920_p0, %p910_p13 }
  0x18   : > { %p923_p2 = pneg %p922_p1 }
  0x1a   : > { %p930_p8 = pnand %p929_p7, %p923_p2 }
  0x1c   : > { %933 = shalt.err (!%p930_p8)
}
  0x1d   : > { %s1032_s12 = smov 128   ;;  %s1033_s13 = smov 8  }
  0x1e   : > { %839 = dma.hbm_to_vmem [thread:$0]  (!%p1132_p12), %s1377_s1, 256, %s174_s7, [#allocation3], %s1032_s12, %s1032_s12, %s1033_s13  }
  0x1f   : > { %s945_s16 = scalar_lea.vmem %s190_s10, 256  ;;  %p953_p9 = scmp.lt.s32.totalorder %s190_s10, %s190_s10 }
  0x20   : > { %p946_p11 = scmp.ne.s32.totalorder %s190_s10, %s945_s16  ;;  %p954_p6 = scmp.lt.s32.totalorder %s945_s16, %s945_s16 }
  0x22   : > { %p948_p0 = pnand %p946_p11, %p910_p13  ;;  %p955_p3 = por %p954_p6, %p953_p9 }
  0x24   : > { %p949_p1 = pneg %p948_p0 }
  0x26   : > { %p956_p2 = pnand %p955_p3, %p949_p1 }
  0x28   : > { %959 = shalt.err (!%p956_p2)
}
  0x29   : > { %842 = dma.hbm_to_vmem [thread:$0]  (!%p1132_p12), %s1379_s3, 256, %s190_s10, [#allocation6], %s1032_s12, %s1032_s12, %s1033_s13  }
  0x2a   : > { %216 = sbr.rel (%p1124_p10) target bundleno = 790 (0x316), region = 40  ;;  %p1387_p4 = scmp.eq.s32.totalorder (!%p1124_p10), %s1096_s22, 0 }
  0x2f   : > { %1003 = dma.done.wait (%p1387_p4), [#allocation3], 256   ;;  %p1388_p13 = pmov %p1387_p4 }
  0x30   : > { %p1389_p7 = pmov %p1387_p4 }
  0x31   : > { %1005 = vsyncadd (%p1388_p13), [#allocation3], 4294967040 }
  0x32   : > { %1007 = dma.done.wait (%p1389_p7), [#allocation6], 256   ;;  %p1390_p6 = pmov %p1387_p4 }
  0x33   : > { %p248_p9 = scmp.lt.s32.totalorder %s1096_s22, 1  ;;  %v260_v0 = vlaneseq  ;;  %s1034_s8 = smov 112   ;;  %v904_v19 = vld [vmem:[#allocation2 + $0x4] ss:$8 sps:$4 sm:$0xff]   ;;  %vm329_vm6 = vcmask 130048   ;;  %v1042_v20 = vmov 0  }
  0x34   : > { %1009 = vsyncadd (%p1390_p6), [#allocation6], 4294967040  ;;  %s1035_s9 = smov 113   ;;  %s1036_s10 = smov 127   ;;  %803 = vmatprep.mubr.msk.bf16.mxu0 %vm329_vm6, %v904_v19  ;;  %899 = vset.pattern.permute.xlu1 %v1042_v20  ;;  %v412_v21 = vld [vmem:[%s1378_s2] sm:$0xff]  ;;  %v413_v22 = vld [vmem:[%s1378_s2 + $0x8] sm:$0xff] }
  0x35   : > { %s249_s25 = scalar_select %p248_p9, %s1096_s22, 1  ;;  %v261_v1 = vand.u32 127, %v260_v0  ;;  %898 = vset.pattern.permute.xlu0 %v1042_v20  ;;  %vm392_vm7 = vcmask 916480   ;;  %vm381_vm8 = vcmask 924672   ;;  %vm370_vm9 = vcmask 1039360   ;;  %vm1252_vm15 = vmneg %vm329_vm6 }
  0x36   : > { %s1037_s11 = smov 1   ;;  %s1038_s12 = smov 15   ;;  %vm359_vm10 = vcmask 7168   ;;  %vm348_vm11 = vcmask 121856   ;;  %vm309_vm14 = vcmask 138240   ;;  %v489_v52 = vshrl.u32 %v260_v0, 7 }
  0x37   : > { %s824_s26 = sshll.u32 %s249_s25, 4  ;;  %v262_v2 = vadd.s32 128, %v261_v1  ;;  %v267_v3 = vand.u32 15, %v261_v1  ;;  %s1039_s13 = smov 16   ;;  %vm1236_vm12 = vmneg %vm359_vm10  ;;  %v902_v51 = vld [vmem:[#allocation2] ss:$8 sps:$4 sm:$0xff]  }
  0x38   : > { %s252_s7 = scalar_lea.vmem %s1376_s0, %s824_s26  ;;  %s1040_s14 = smov 17   ;;  %vm1244_vm13 = vmneg %vm348_vm11  ;;  %v490_v58 = vsub.s32 0, %v489_v52  ;;  %v494_v63 = vsub.s32 4, %v489_v52  ;;  %v907_v19 = vld [vmem:[#allocation5 + $0x4] ss:$8 sps:$4 sm:$0xff]  }
  0x39   : > { %v274_v4 = vand.u32 15, %v262_v2  ;;  %vm287_vm0 = vcmp.ne.s32.totalorder %v267_v3, 15  ;;  %v1170_v5 = vld [vmem:[%s252_s7] sm:$0xff]  ;;  %v1172_v6 = vld [vmem:[%s252_s7 + $0x8] sm:$0xff]  ;;  %vm292_vm1 = vcmp.ne.s32.totalorder %v267_v3, 0  ;;  %s1041_s15 = smov 111   ;;  %818 = vmatprep.mubr.msk.bf16.mxu1 %vm329_vm6, %v907_v19 }
  0x3a   : > { %v1176_v7 = vcombine.low %v1170_v5, %v1172_v6  ;;  %v786_v11 = vcombine.high %v1170_v5, %v1172_v6  ;;  %v659_v52 = vunpack.c.h.bf16 %v1170_v5  ;;  %s1043_s23 = smov [#allocation7]  }
  0x3b   : > { %vm288_vm2 = vcmp.ne.s32.totalorder %v274_v4, 15  ;;  %vm293_vm3 = vcmp.ne.s32.totalorder %v274_v4, 0  ;;  %s964_s25 = sshll.u32 %s1043_s23, 4  ;;  %s965_s25 = int_to_ptr.vmem [resolvable:$false] %s964_s25 }
  0x3c   : > { %vm1178_vm4 = vmpackc.low %vm288_vm2, %vm287_vm0  ;;  %388 = vrot.lane.b32.xlu0 %v1176_v7, %s1034_s8  ;;  %s966_s26 = scalar_lea.vmem %s965_s25, 1024 }
  0x3d   : > { %v290_v9 = vsel %vm1178_vm4, %v1170_v5, 0  ;;  %v291_v10 = vsel %vm1178_vm4, %v1172_v6, 0  ;;  %vm1192_vm5 = vmpackc.low %vm293_vm3, %vm292_vm1  ;;  %vm403_vm1 = vcmask 908288   ;;  %v487_v60 = vsel %vm1178_vm4, 65537, %v1042_v20 }
  0x3e   : > { %v783_v13 = vcombine.low %v290_v9, %v291_v10  ;;  %v295_v14 = vsel %vm1192_vm5, %v1170_v5, 0  ;;  %v296_v15 = vsel %vm1192_vm5, %v1172_v6, 0  ;;  %v784_v16 = vcombine.high %v290_v9, %v291_v10  ;;  %vm1260_vm0 = vmneg %vm309_vm14 }
  0x3f   : > { %v787_v17 = vcombine.low %v295_v14, %v296_v15  ;;  %v788_v18 = vcombine.high %v295_v14, %v296_v15  ;;  %v500_v0 = vsel %vm1192_vm5, 65537, %v1042_v20  ;;  %v591_v20 = vld [vmem:[%s1380_s4] sm:$0xff] }
  0x40   : > { %377 = vrot.lane.b32.xlu1 %v783_v13, %s1035_s9  ;;  %390 = vrot.lane.b32.xlu0 %v786_v11, %s1034_s8  ;;  %v504_v8 = vrot.slane %v500_v0, %v490_v58  ;;  %v508_v15 = vrot.slane %v500_v0, %v494_v63 }
  0x42   : > { %vm509_vm4 = vcmp.ne.s16.totalorder %v504_v8, 0  ;;  %vm510_vm5 = vcmp.ne.s16.totalorder %v508_v15, 0 }
  0x44   : > { %379 = vrot.lane.b32.xlu1 %v784_v16, %s1035_s9  ;;  %366 = vrot.lane.b32.xlu0 %v787_v17, %s1036_s10 }
  0x48   : > { %368 = vrot.lane.b32.xlu1 %v788_v18, %s1036_s10  ;;  %355 = vrot.lane.b32.xlu0 %v783_v13, %s1037_s11 }
  0x4c   : > { %357 = vrot.lane.b32.xlu1 %v784_v16, %s1037_s11  ;;  %344 = vrot.lane.b32.xlu0 %v787_v17, %s1038_s12 }
  0x50   : > { %346 = vrot.lane.b32.xlu1 %v788_v18, %s1038_s12  ;;  %325 = vrot.lane.b32.xlu0 %v1176_v7, %s1039_s13 }
  0x54   : > { %327 = vrot.lane.b32.xlu1 %v786_v11, %s1039_s13  ;;  %305 = vrot.lane.b32.xlu0 %v783_v13, %s1040_s14  ;;  %v495_v13 = vrot.slane %v487_v60, %v494_v63 }
  0x56   : > { %vm497_vm3 = vcmp.ne.s16.totalorder %v495_v13, 0 }
  0x58   : > { %307 = vrot.lane.b32.xlu1 %v784_v16, %s1040_s14  ;;  %399 = vrot.lane.b32.xlu0 %v787_v17, %s1041_s15 }
  0x5c   : > { %401 = vrot.lane.b32.xlu1 %v788_v18, %s1041_s15  ;;  %416 = vperm.xlu0 %898, %v412_v21   ;;  %v592_v21 = vld [vmem:[%s1380_s4 + $0x8] sm:$0xff] }
  0x60   : > { %421 = vperm.xlu1 %899, %v413_v22  }
  0xae   : > { %v389_v23 = vpop.permute.xlu0 %388 }
  0xb2   : > { %v378_v24 = vpop.permute.xlu1 %377  ;;  %v391_v25 = vpop.permute.xlu0 %390 }
  0xb3   : > { %791 = vmatprep.subr.msk.bf16.mxu0 %vm392_vm7, %v391_v25  ;;  %v393_v26 = vsel %vm392_vm7, %v389_v23, %v391_v25 }
  0xb4   : > { %437 = vmatpush1.bf16.msra.mxu0 %v393_v26 }
  0xb6   : > { %v380_v27 = vpop.permute.xlu1 %379  ;;  %v367_v29 = vpop.permute.xlu0 %366 }
  0xb7   : > { %792 = vmatprep.subr.msk.bf16.mxu0 %vm381_vm8, %v380_v27  ;;  %v382_v28 = vsel %vm381_vm8, %v378_v24, %v380_v27 }
  0xb8   : > { %439 = vmatpush1.bf16.msra.mxu0 %v382_v28 }
  0xba   : > { %v369_v30 = vpop.permute.xlu1 %368  ;;  %v356_v32 = vpop.permute.xlu0 %355 }
  0xbb   : > { %793 = vmatprep.subr.msk.bf16.mxu0 %vm370_vm9, %v369_v30  ;;  %v371_v31 = vsel %vm370_vm9, %v367_v29, %v369_v30 }
  0xbc   : > { %441 = vmatpush1.bf16.msra.mxu0 %v371_v31 }
  0xbd   : > { %442 = vmatprep.subr.bf16.mxu0 %v786_v11 }
  0xbe   : > { %v358_v33 = vpop.permute.xlu1 %357  ;;  %v345_v35 = vpop.permute.xlu0 %344 }
  0xbf   : > { %v360_v34 = vsel %vm359_vm10, %v356_v32, %v358_v33 }
  0xc0   : > { %443 = vmatpush1.bf16.msra.mxu0 %v1176_v7  ;;  %v491_v7 = vrot.slane %v487_v60, %v490_v58 }
  0xc1   : > { %444 = vmatprep.subr.bf16.mxu0 %v360_v34 }
  0xc2   : > { %v347_v37 = vpop.permute.xlu1 %346  ;;  %v326_v39 = vpop.permute.xlu0 %325  ;;  %vm496_vm2 = vcmp.ne.s16.totalorder %v491_v7, 0 }
  0xc3   : > { %v349_v38 = vsel %vm348_vm11, %v345_v35, %v347_v37 }
  0xc4   : > { %795 = vmatpush1.bf16.msk.msra.mxu0 %vm1236_vm12, %v356_v32 }
  0xc5   : > { %446 = vmatprep.subr.bf16.mxu0 %v349_v38 }
  0xc6   : > { %v328_v41 = vpop.permute.xlu1 %327  ;;  %v306_v43 = vpop.permute.xlu0 %305 }
  0xc7   : > { %v330_v42 = vsel %vm329_vm6, %v326_v39, %v328_v41 }
  0xc8   : > { %797 = vmatpush1.bf16.msk.msra.mxu0 %vm1244_vm13, %v345_v35 }
  0xc9   : > { %448 = vmatprep.subr.bf16.mxu0 %v330_v42 }
  0xca   : > { %v308_v45 = vpop.permute.xlu1 %307  ;;  %v400_v48 = vpop.permute.xlu0 %399 }
  0xcb   : > { %v310_v46 = vsel %vm309_vm14, %v306_v43, %v308_v45 }
  0xcc   : > { %799 = vmatpush1.bf16.msk.msra.mxu0 %vm1252_vm15, %v326_v39 }
  0xcd   : > { %450 = vmatprep.subr.bf16.mxu0 %v310_v46 }
  0xce   : > { %v402_v49 = vpop.permute.xlu1 %401 }
  0xcf   : > { %v404_v50 = vsel %vm403_vm1, %v400_v48, %v402_v49  ;;  %v905_v48 = vld [vmem:[#allocation5] ss:$8 sps:$4 sm:$0xff]  }
  0xd0   : > { %801 = vmatpush1.bf16.msk.msra.mxu0 %vm1260_vm0, %v306_v43 }
  0xd1   : > { %802 = vmatprep.subr.msk.bf16.mxu0 %vm403_vm1, %v402_v49  ;;  %v658_v49 = vunpack.c.l.bf16 %v1170_v5 }
  0xd4   : > { %467 = vmatpush2.bf16.msra.mxu0 %v404_v50 }
  0xd7   : > { %469 = vmatmul.mubr.bf16.vlgmr.msra.gmra.mxu0 %v902_v51  ;;  %v417_v53 = vpop.permute.xlu0 %416 }
  0xdb   : > { %v422_v56 = vpop.permute.xlu1 %421 }
 0x197   : > { %v470_v54 = vpop.f32.mrf.mxu0 }
 0x198   : > { %v471_v57 = vadd.f32 %v470_v54, %v417_v53 }
 0x199   : > { %v472_v55 = vpop.f32.mrf.mxu0 }
 0x19a   : > { %v473_v61 = vadd.f32 %v472_v55, %v417_v53  ;;  %v479_v2 = vmax.f32 %v471_v57, 0.0  ;;  %v660_v55 = vunpack.c.l.bf16 %v1172_v6 }
 0x19b   : > { %v474_v59 = vpop.f32.mrf.mxu0 }
 0x19c   : > { %v475_v62 = vadd.f32 %v474_v59, %v422_v56  ;;  %v480_v9 = vmax.f32 %v473_v61, 0.0  ;;  %v661_v61 = vunpack.c.h.bf16 %v1172_v6 }
 0x19d   : > { %v476_v1 = vpop.f32.mrf.mxu0 }
 0x19e   : > { %v481_v3 = vmax.f32 %v475_v62, 0.0  ;;  %v477_v4 = vadd.f32 %v476_v1, %v422_v56 }
 0x1a0   : > { %v483_v10 = vpack.c.bf16 %v481_v3, %v479_v2  ;;  %v482_v11 = vmax.f32 %v477_v4, 0.0 }
 0x1a2   : > { %v484_v14 = vpack.c.bf16 %v482_v11, %v480_v9  ;;  %573 = vrot.lane.b32.xlu1 %v483_v10, %s1034_s8  ;;  %v498_v16 = vsel %vm496_vm2, %v483_v10, 0  ;;  %v511_v12 = vsel %vm509_vm4, %v483_v10, 0 }
 0x1a4   : > { %575 = vrot.lane.b32.xlu0 %v484_v14, %s1034_s8  ;;  %v499_v17 = vsel %vm497_vm3, %v484_v14, 0  ;;  %v512_v18 = vsel %vm510_vm5, %v484_v14, 0  ;;  %s245_s8 = sand.u32 1, %s1020_s19  }
 0x1a5   : > { %s1335_s17 = scalar_lea.sflag [#allocation4], %s245_s8 }
 0x1a6   : > { %564 = vrot.lane.b32.xlu1 %v498_v16, %s1035_s9 }
 0x1a8   : > { %566 = vrot.lane.b32.xlu0 %v499_v17, %s1035_s9  ;;  %s780_s9 = sshll.u32 %s245_s8, 5 }
 0x1aa   : > { %555 = vrot.lane.b32.xlu1 %v511_v12, %s1036_s10 }
 0x1ac   : > { %557 = vrot.lane.b32.xlu0 %v512_v18, %s1036_s10  ;;  %s247_s10 = scalar_lea.vmem [#allocation7], %s780_s9 }
 0x1ae   : > { %546 = vrot.lane.b32.xlu1 %v498_v16, %s1037_s11 }
 0x1b0   : > { %548 = vrot.lane.b32.xlu0 %v499_v17, %s1037_s11  ;;  %s688_s11 = sshll.u32 %s247_s10, 4  ;;  %s1326_s11 = int_to_ptr.vmem [resolvable:$true] %s688_s11 }
 0x1b1   : > { %p967_p11 = scmp.lt.s32.totalorder %s1326_s11, %s965_s25 }
 0x1b2   : > { %537 = vrot.lane.b32.xlu1 %v511_v12, %s1038_s12 }
 0x1b4   : > { %539 = vrot.lane.b32.xlu0 %v512_v18, %s1038_s12  ;;  %s825_s12 = sshll.u32 %s1096_s22, 9  ;;  %s960_s22 = scalar_lea.vmem %s1326_s11, 512 }
 0x1b5   : > { %s1331_s16 = scalar_lea.hbm %s1381_s5, %s825_s12  ;;  %p961_p10 = scmp.ne.s32.totalorder %s1326_s11, %s960_s22 }
 0x1b6   : > { %526 = vrot.lane.b32.xlu1 %v483_v10, %s1039_s13  ;;  %p968_p0 = scmp.lt.s32.totalorder %s966_s26, %s960_s22 }
 0x1b7   : > { %p962_p12 = pnand %p961_p10, %p1113_p5 }
 0x1b8   : > { %528 = vrot.lane.b32.xlu0 %v484_v14, %s1039_s13  ;;  %p969_p1 = por %p968_p0, %p967_p11 }
 0x1b9   : > { %p963_p8 = pneg %p962_p12 }
 0x1ba   : > { %515 = vrot.lane.b32.xlu1 %v498_v16, %s1040_s14 }
 0x1bb   : > { %p970_p3 = pnand %p969_p1, %p963_p8 }
 0x1bc   : > { %517 = vrot.lane.b32.xlu0 %v499_v17, %s1040_s14 }
 0x1be   : > { %582 = vrot.lane.b32.xlu1 %v511_v12, %s1041_s15 }
 0x1c0   : > { %584 = vrot.lane.b32.xlu0 %v512_v18, %s1041_s15 }
 0x1c2   : > { %595 = vperm.xlu1 %899, %v591_v20  }
 0x1c4   : > { %600 = vperm.xlu0 %898, %v592_v21  }
 0x214   : > { %v574_v22 = vpop.permute.xlu1 %573 }
 0x216   : > { %v576_v23 = vpop.permute.xlu0 %575 }
 0x217   : > { %806 = vmatprep.subr.msk.bf16.mxu1 %vm392_vm7, %v576_v23  ;;  %v577_v24 = vsel %vm392_vm7, %v574_v22, %v576_v23 }
 0x218   : > { %616 = vmatpush1.bf16.msra.mxu1 %v577_v24  ;;  %v565_v25 = vpop.permute.xlu1 %564 }
 0x21a   : > { %v567_v26 = vpop.permute.xlu0 %566 }
 0x21b   : > { %807 = vmatprep.subr.msk.bf16.mxu1 %vm381_vm8, %v567_v26  ;;  %v568_v27 = vsel %vm381_vm8, %v565_v25, %v567_v26 }
 0x21c   : > { %618 = vmatpush1.bf16.msra.mxu1 %v568_v27  ;;  %v556_v28 = vpop.permute.xlu1 %555 }
 0x21e   : > { %v558_v29 = vpop.permute.xlu0 %557 }
 0x21f   : > { %808 = vmatprep.subr.msk.bf16.mxu1 %vm370_vm9, %v558_v29  ;;  %v559_v30 = vsel %vm370_vm9, %v556_v28, %v558_v29 }
 0x220   : > { %620 = vmatpush1.bf16.msra.mxu1 %v559_v30  ;;  %v547_v31 = vpop.permute.xlu1 %546 }
 0x221   : > { %621 = vmatprep.subr.bf16.mxu1 %v484_v14 }
 0x222   : > { %v549_v32 = vpop.permute.xlu0 %548 }
 0x223   : > { %v550_v33 = vsel %vm359_vm10, %v547_v31, %v549_v32 }
 0x224   : > { %622 = vmatpush1.bf16.msra.mxu1 %v483_v10  ;;  %v538_v34 = vpop.permute.xlu1 %537 }
 0x225   : > { %623 = vmatprep.subr.bf16.mxu1 %v550_v33 }
 0x226   : > { %v540_v35 = vpop.permute.xlu0 %539 }
 0x227   : > { %v541_v37 = vsel %vm348_vm11, %v538_v34, %v540_v35 }
 0x228   : > { %810 = vmatpush1.bf16.msk.msra.mxu1 %vm1236_vm12, %v547_v31  ;;  %v527_v38 = vpop.permute.xlu1 %526 }
 0x229   : > { %625 = vmatprep.subr.bf16.mxu1 %v541_v37 }
 0x22a   : > { %v529_v39 = vpop.permute.xlu0 %528 }
 0x22b   : > { %v530_v41 = vsel %vm329_vm6, %v527_v38, %v529_v39 }
 0x22c   : > { %812 = vmatpush1.bf16.msk.msra.mxu1 %vm1244_vm13, %v538_v34  ;;  %v516_v42 = vpop.permute.xlu1 %515 }
 0x22d   : > { %627 = vmatprep.subr.bf16.mxu1 %v530_v41 }
 0x22e   : > { %v518_v43 = vpop.permute.xlu0 %517 }
 0x22f   : > { %v519_v45 = vsel %vm309_vm14, %v516_v42, %v518_v43 }
 0x230   : > { %814 = vmatpush1.bf16.msk.msra.mxu1 %vm1252_vm15, %v527_v38  ;;  %v583_v46 = vpop.permute.xlu1 %582 }
 0x231   : > { %629 = vmatprep.subr.bf16.mxu1 %v519_v45 }
 0x232   : > { %v585_v36 = vpop.permute.xlu0 %584 }
 0x233   : > { %v586_v40 = vsel %vm403_vm1, %v583_v46, %v585_v36 }
 0x234   : > { %816 = vmatpush1.bf16.msk.msra.mxu1 %vm1260_vm0, %v516_v42 }
 0x235   : > { %817 = vmatprep.subr.msk.bf16.mxu1 %vm403_vm1, %v585_v36 }
 0x238   : > { %646 = vmatpush2.bf16.msra.mxu1 %v586_v40 }
 0x23b   : > { %648 = vmatmul.mubr.bf16.vlgmr.msra.gmra.mxu1 %v905_v48 }
 0x23d   : > { %v596_v50 = vpop.permute.xlu1 %595 }
 0x23f   : > { %v601_v56 = vpop.permute.xlu0 %600 }
 0x2fb   : > { %v649_v51 = vpop.f32.mrf.mxu1 }
 0x2fc   : > { %v650_v44 = vadd.f32 %v649_v51, %v596_v50 }
 0x2fd   : > { %v651_v47 = vpop.f32.mrf.mxu1 }
 0x2fe   : > { %v662_v53 = vadd.f32 %v658_v49, %v650_v44  ;;  %v652_v54 = vadd.f32 %v651_v47, %v596_v50 }
 0x2ff   : > { %v653_v57 = vpop.f32.mrf.mxu1 }
 0x300   : > { %v666_v58 = vmax.f32 %v662_v53, 0.0  ;;  %v663_v59 = vadd.f32 %v659_v52, %v652_v54  ;;  %v654_v60 = vadd.f32 %v653_v57, %v601_v56 }
 0x301   : > { %v655_v62 = vpop.f32.mrf.mxu1 }
 0x302   : > { %670 = vst [vmem:[%s247_s10] sm:$0xff] %v666_v58  ;;  %v667_v5 = vmax.f32 %v663_v59, 0.0  ;;  %v664_v63 = vadd.f32 %v660_v55, %v654_v60  ;;  %v656_v1 = vadd.f32 %v655_v62, %v601_v56 }
 0x304   : > { %671 = vst [vmem:[%s247_s10 + $0x8] sm:$0xff] %v667_v5  ;;  %v668_v2 = vmax.f32 %v664_v63, 0.0  ;;  %v665_v3 = vadd.f32 %v661_v61, %v656_v1 }
 0x306   : > { %672 = vst [vmem:[%s247_s10 + $0x10] sm:$0xff] %v668_v2  ;;  %v669_v6 = vmax.f32 %v665_v3, 0.0 }
 0x308   : > { %673 = vst [vmem:[%s247_s10 + $0x18] sm:$0xff] %v669_v6 }
 0x309   : > { %973 = shalt.err (!%p970_p3)
}
 0x30a   : > { %s974_s30 = scalar_lea.hbm %s1331_s16, 512  ;;  %s978_s8 = scalar_lea.hbm %s1381_s5, 1024 }
 0x30b   : > { %p975_p2 = scmp.ne.s32.totalorder %s1331_s16, %s974_s30  ;;  %p979_p7 = scmp.lt.s32.totalorder %s1331_s16, %s1381_s5 }
 0x30c   : > { %p980_p6 = scmp.lt.s32.totalorder %s978_s8, %s974_s30 }
 0x30d   : > { %p976_p4 = pnand %p975_p2, %p1113_p5 }
 0x30e   : > { %p981_p9 = por %p980_p6, %p979_p7 }
 0x30f   : > { %p977_p13 = pneg %p976_p4 }
 0x311   : > { %p982_p10 = pnand %p981_p9, %p977_p13 }
 0x313   : > { %985 = shalt.err (!%p982_p10)
}
 0x314   : > { %s1044_s12 = smov 256  }
 0x315   : > { %834 = dma.vmem_to_hbm [thread:$0]  (%p1113_p5), %s1326_s11, 512, %s1331_s16, %s1335_s17, %s1044_s12, %s1044_s12, %s1039_s13  }
 0x316 PF: > { %p851_p12 = scmp.ge.s32.totalorder %s1028_s21, 2  ;;  %s703_s14 = sand.u32 1, %s1016_s18  }
 0x317   : > { %p1403_p8 = scmp.ne.s32.totalorder %s1384_s29, 0  ;;  %s704_s15 = scalar_lea.sflag [#allocation4], %s703_s14 }
 0x319   : > { %p844_p11 = pnand %p851_p12, %p1403_p8 }
 0x31b   : > { %p845_p0 = pneg %p844_p11 }
 0x31d   : > { %1011 = dma.done.wait (%p845_p0), %s704_s15, 512  }
 0x31e   : > { %1013 = vsyncadd (%p845_p0), %s704_s15, 4294966784  ;;  %p17_p1 = scmp.ge.s32.totalorder %s1100_s24, 4   ;;  %s1404_s18 = smov %s1020_s19 }
 0x31f   : > { %s1405_s19 = smov %s1024_s20  ;;  %s1406_s20 = smov %s1111_s27 }
 0x320   : > { %s1407_s21 = smov %s1100_s24  ;;  %19 = sbr.rel (!%p17_p1) target bundleno = 5 (0x5), region = 84 }
 0x325   :  { %709 = vsyncpa [#allocation3], 1 }
 0x326   :  { %711 = vsyncpa [#allocation3 + $0x1], 1 }
 0x327   :  { %712 = vsyncpa [#allocation6], 1 }
 0x328   :  { %713 = vsyncpa [#allocation4], 1 }
 0x329   :  { %715 = vsyncpa [#allocation4 + $0x1], 1 }

</bundles_post_ra>
